<compile_context>
chip_gen: v5e
topology: v5e:2x2
jax: 0.10.0
libtpu: 0.0.40
codegen_flags: <defaults>
</compile_context>

<pallas_src>
import jax
import jax.numpy as jnp
from jax.experimental import pallas as pl
from jax.experimental.pallas import tpu as pltpu

_TILE_BYTES_TARGET = 8 * 1024 * 1024        # ~8 MiB lane-dense x tiles
_VMEM_LIMIT_BYTES = 48 * 1024 * 1024        # 2x in + 2x out double buffers + headroom


def _drop_path_kernel(x_ref, s_ref, o_ref):
    # x_ref: (TB, TN) tile of the flattened input in VMEM
    # s_ref: (TB, 1) per-row scale (0 or 1/keep_prob) in the compute dtype
    # o_ref: (TB, TN) output tile in VMEM
    o_ref[...] = (x_ref[...] * s_ref[...]).astype(o_ref.dtype)


def drop_path_pallas(x, drop_prob=0.0, training=False, key=None,
                     block_b=None, block_n=None, donate_x=False):
    """JAX/Pallas equivalent of DropPath.forward (arbitrary rank >= 1 input)."""
    if drop_prob is None or float(drop_prob) == 0.0 or not training:
        return x
    if key is None:
        raise ValueError(
            "drop_path_pallas requires a PRNG `key` when training=True and drop_prob > 0.")
    keep_prob = 1.0 - float(drop_prob)

    orig_shape = x.shape
    B = orig_shape[0]
    xf = x.reshape(B, -1)                       # (B, N): batch rows, lane-dense features
    N = xf.shape[1]

    # Pad the feature dim to a multiple of 128 so stores are unmasked lane-dense.
    Np = ((N + 127) // 128) * 128
    if Np != N:
        xf = jnp.pad(xf, ((0, 0), (0, Np - N)))

    # Native-dtype multiply for 16-bit floats (v6e/v7x bf16 VALU); f32 otherwise.
    compute_dtype = x.dtype if x.dtype in (jnp.bfloat16, jnp.float16) else jnp.float32

    # Per-sample scale: floor(keep_prob + U[0,1)) / keep_prob -> {0, 1/keep_prob}
    u = jax.random.uniform(key, (B,), dtype=jnp.float32)
    scale = (jnp.floor(keep_prob + u) / keep_prob).reshape(B, 1).astype(compute_dtype)

    itemsize = jnp.dtype(x.dtype).itemsize
    # sublane packing factor: 8 rows (32-bit), 16 (bf16/f16), 32 (int8/fp8)
    sub = {4: 8, 2: 16, 1: 32}.get(itemsize, 8)

    if block_b is None:
        if B <= 4 * sub:
            block_b = B                         # full dim: always a legal block shape
        else:
            block_b = 4 * sub                   # sublane-aligned; cdiv handles ragged tail
    if block_n is None:
        # ~8 MiB lane-dense tiles: amortizes per-step pipeline overhead, fits
        # 2x(in)+2x(out) double buffers well inside the 48 MiB scoped VMEM limit.
        lane_budget = max(
            128, (_TILE_BYTES_TARGET // (block_b * itemsize)) // 128 * 128)
        block_n = min(Np, lane_budget)

    # Ensure >= 2 grid steps on a parallel axis so both v7x TensorCores get work.
    if pl.cdiv(B, block_b) * pl.cdiv(Np, block_n) == 1:
        if block_n >= 256:
            block_n = ((block_n // 2) + 127) // 128 * 128
        elif block_b >= 2 * sub and block_b % (2 * sub) == 0:
            block_b = block_b // 2

    grid = (pl.cdiv(B, block_b), pl.cdiv(Np, block_n))

    out = pl.pallas_call(
        _drop_path_kernel,
        out_shape=jax.ShapeDtypeStruct((B, Np), x.dtype),
        grid=grid,
        in_specs=[
            pl.BlockSpec((block_b, block_n), lambda i, j: (i, j)),  # x tile
            pl.BlockSpec((block_b, 1), lambda i, j: (i, 0)),        # per-row scale
        ],
        out_specs=pl.BlockSpec((block_b, block_n), lambda i, j: (i, j)),
        compiler_params=pltpu.CompilerParams(
            dimension_semantics=("parallel", "parallel"),
            vmem_limit_bytes=_VMEM_LIMIT_BYTES,
        ),
        # Optional in-place update when the caller can donate x (no-op otherwise).
        input_output_aliases={0: 0} if donate_x else {},
    )(xf, scale)

    if Np != N:
        out = out[:, :N]
    return out.reshape(orig_shape)


def _reference(x, drop_prob, key):
    """Pure-JAX reference with the same randoms as the kernel wrapper."""
    keep_prob = 1.0 - drop_prob
    u = jax.random.uniform(key, (x.shape[0],), dtype=jnp.float32)
    mask = jnp.floor(keep_prob + u).reshape((x.shape[0],) + (1,) * (x.ndim - 1))
    return x / keep_prob * mask.astype(x.dtype)


if __name__ == "__main__":
    key = jax.random.PRNGKey(0)
    kx, kd, kx2, kd2, kx3, kd3, kx4, kd4 = jax.random.split(key, 8)
    drop_prob = 0.3

    # --- test 1: small NCHW input consistent with the module's usage -------
    x = jax.random.normal(kx, (2, 4, 16, 16), dtype=jnp.float32)
    out = drop_path_pallas(x, drop_prob=drop_prob, training=True, key=kd)
    out = jax.block_until_ready(out)
    ref = _reference(x, drop_prob, kd)
    assert out.shape == x.shape
    assert jnp.allclose(out, ref, rtol=1e-5, atol=1e-6), "training-mode mismatch"

    # --- test 2: multi-tile grid (forced small blocks -> grid (2, 8)) ------
    x2 = jax.random.normal(kx2, (16, 8, 16, 16), dtype=jnp.float32)
    out2 = drop_path_pallas(x2, drop_prob=drop_prob, training=True, key=kd2,
                            block_b=8, block_n=256)
    out2 = jax.block_until_ready(out2)
    ref2 = _reference(x2, drop_prob, kd2)
    assert jnp.allclose(out2, ref2, rtol=1e-5, atol=1e-6), "tiled-grid mismatch"

    # --- test 3: ragged feature dim (N=300 -> padded 384) and ragged batch -
    x3 = jax.random.normal(kx3, (4, 3, 10, 10), dtype=jnp.float32)
    out3 = drop_path_pallas(x3, drop_prob=drop_prob, training=True, key=kd3)
    out3 = jax.block_until_ready(out3)
    ref3 = _reference(x3, drop_prob, kd3)
    assert out3.shape == x3.shape
    assert jnp.allclose(out3, ref3, rtol=1e-5, atol=1e-6), "padded-N mismatch"

    # --- test 4: bf16 native-dtype multiply path ----------------------------
    x4 = jax.random.normal(kx4, (8, 4, 8, 8), dtype=jnp.bfloat16)
    out4 = drop_path_pallas(x4, drop_prob=drop_prob, training=True, key=kd4)
    out4 = jax.block_until_ready(out4)
    ref4 = _reference(x4.astype(jnp.float32), drop_prob, kd4)
    assert jnp.allclose(out4.astype(jnp.float32), ref4, rtol=3e-2, atol=3e-2), \
        "bf16 mismatch"

    # --- eval mode / drop_prob == 0 must be identity (no kernel needed) ----
    out_eval = drop_path_pallas(x, drop_prob=drop_prob, training=False, key=kd)
    assert jnp.allclose(out_eval, x), "eval-mode mismatch"
    out_p0 = drop_path_pallas(x, drop_prob=0.0, training=True, key=kd)
    assert jnp.allclose(out_p0, x), "drop_prob=0 mismatch"

    print("KERNEL_OK")
</pallas_src>

<mosaic_0001>
module attributes {stable_mosaic.version = 11 : i64} {
  func.func @_drop_path_kernel(%arg0: i32, %arg1: i32, %arg2: memref<2x512xf32, #tpu.memory_space<vmem>>, %arg3: memref<2x1xf32, #tpu.memory_space<vmem>>, %arg4: memref<2x512xf32, #tpu.memory_space<vmem>>) attributes {dimension_semantics = [#tpu.dimension_semantics<parallel>, #tpu.dimension_semantics<parallel>], iteration_bounds = array<i64: 1, 2>, scalar_prefetch = 0 : i64, scratch_operands = 0 : i64, tpu.core_type = #tpu.core_type<tc>, window_params = [{transform_indices = @transform_0, window_bounds = array<i64: 2, 512>}, {transform_indices = @transform_1, window_bounds = array<i64: 2, 1>}, {transform_indices = @transform_2, window_bounds = array<i64: 2, 512>}]} {
    %c0 = arith.constant 0 : index
    %c0_0 = arith.constant 0 : index
    %0 = vector.load %arg2[%c0, %c0_0] : memref<2x512xf32, #tpu.memory_space<vmem>>, vector<2x512xf32>
    %c0_1 = arith.constant 0 : index
    %c0_2 = arith.constant 0 : index
    %1 = vector.load %arg3[%c0_1, %c0_2] : memref<2x1xf32, #tpu.memory_space<vmem>>, vector<2x1xf32>
    %2 = vector.broadcast %1 : vector<2x1xf32> to vector<2x512xf32>
    %3 = arith.mulf %0, %2 : vector<2x512xf32>
    %c0_3 = arith.constant 0 : index
    %c0_4 = arith.constant 0 : index
    %4 = vector.load %arg4[%c0_3, %c0_4] : memref<2x512xf32, #tpu.memory_space<vmem>>, vector<2x512xf32>
    tpu.vector_store %arg4[%c0_3, %c0_4], %3 {strides = array<i32>} : memref<2x512xf32, #tpu.memory_space<vmem>>, vector<2x512xf32>,
    return
  }
  func.func @transform_0(%arg0: i32, %arg1: i32) -> (i32, i32) {
    %c0_i32 = arith.constant 0 : i32
    return %arg0, %arg1 : i32, i32
  }
  func.func @transform_1(%arg0: i32, %arg1: i32) -> (i32, i32) {
    %c0_i32 = arith.constant 0 : i32
    %c0_i32_0 = arith.constant 0 : i32
    return %arg0, %c0_i32 : i32, i32
  }
  func.func @transform_2(%arg0: i32, %arg1: i32) -> (i32, i32) {
    %c0_i32 = arith.constant 0 : i32
    return %arg0, %arg1 : i32, i32
  }
}

</mosaic_0001>

<bundles_post_ra>
// kernel: tpu_custom_call.1
= control target key start
LH: loop header
LB: loop body
LE: loop exit
PB: predicated region body
PF: predicated region fallthrough
CT: control target
= control target key end

     0   :  { %7 = vsyncpa [#allocation3], 0  ;;  %s667_s0 = inlined_call_operand.hbm [shape: f32[2,1024], index: 0, kind: input, shape index: {}]   ;;  %s668_s1 = inlined_call_operand.vmem [shape: f32[2,1], index: 1, kind: input, shape index: {}]   ;;  %s669_s2 = inlined_call_operand.hbm [shape: f32[2,1024], index: 2, kind: output, shape index: {}]  }
   0x1   :  { %9 = vsyncpa [#allocation3 + $0x1], 0 }
   0x2   :  { %10 = vsyncpa [#allocation4], 0 }
   0x3   :  { %12 = vsyncpa [#allocation4 + $0x1], 0  ;;  %s544_s9 = smov 0   ;;  %s546_s10 = smov 0  }
   0x4   :  { %s548_s11 = smov 0   ;;  %s550_s12 = smov 0  }
   0x5   :  { %s552_s13 = smov 0   ;;  %s554_s14 = smov 0  }
   0x6 LB: > { %s330_s15 = sadd.s32 4294967295, %s525_s14   ;;  %s331_s16 = sadd.s32 4294967294, %s525_s14   ;;  %s525_s14 = sphi %s554_s14, %s18_s14   ;;  %s521_s13 = sphi %s552_s13, %s678_s13   ;;  %s517_s12 = sphi %s550_s12, %s677_s12   ;;  %s513_s11 = sphi %s548_s11, %s676_s11   ;;  %s509_s10 = sphi %s546_s10, %s675_s10   ;;  %s505_s9 = sphi %s544_s9, %s674_s9  }
   0x7   : > { %s27_s17 = sadd.s32 1, %s521_s13  ;;  %s39_s18 = sadd.s32 1, %s513_s11 }
   0x8   : > { %p28_p0 = scmp.ge.s32.totalorder %s27_s17, 2  ;;  %p46_p1 = scmp.ne.s32.totalorder %s513_s11, %s509_s10 }
   0x9   : > { %p47_p2 = scmp.eq.s32.totalorder %s525_s14, 0  ;;  %p52_p3 = scmp.ne.s32.totalorder %s509_s10, %s505_s9 }
   0xa   : > { %s680_s17 = smov (%p28_p0, %s27_s17), 0  ;;  %p53_p5 = scmp.eq.s32.totalorder %s330_s15, 0 }
   0xb   : > { %p585_p4 = por %p47_p2, %p46_p1  ;;  %s35_s20 = ssub.s32 %s521_s13, %s680_s17 }
   0xc   : > { %p104_p6 = scmp.eq.s32.totalorder %s330_s15, 1  ;;  %p37_p7 = scmp.eq.s32.totalorder %s35_s20, 0 }
   0xd   : > { %p591_p8 = por %p53_p5, %p52_p3  ;;  %p110_p10 = scmp.eq.s32.totalorder %s331_s16, 1 }
   0xe   : > { %p595_p9 = por %p104_p6, %p46_p1  ;;  %p334_p12 = scmp.ge.s32.totalorder %s525_s14, 2 }
   0xf   : > { %s600_s23 = scalar_select %p37_p7, %s513_s11, %s39_s18  }
  0x10   : > { %p602_p11 = por %p110_p10, %p52_p3  ;;  %p360_p13 = scmp.lt.s32.totalorder %s525_s14, 2 }
  0x11   : > { %s137_s25 = sand.u32 1, %s513_s11   ;;  %s346_s27 = sshll.u32 %s521_s13, 3 }
  0x12   : > { %s335_s26 = sshll.u32 %s137_s25, 3  ;;  %s148_s30 = scalar_lea.hbm %s667_s0, %s346_s27 }
  0x13   : > { %s141_s3 = scalar_lea.vmem [#allocation2], %s335_s26  ;;  %s150_s5 = sshll.u32 %s148_s30, 4  ;;  %s151_s5 = int_to_ptr.hbm [resolvable:$true] %s150_s5 }
  0x14   : > { %s152_s4 = sshll.u32 %s141_s3, 4  ;;  %p353_p0 = pnand %p360_p13, %p585_p4  ;;  %s153_s4 = int_to_ptr.vmem [resolvable:$true] %s152_s4 }
  0x15   : > { %p338_p1 = scmp.ge.s32.totalorder %s525_s14, 1  ;;  %p157_p2 = scmp.lt.s32.totalorder %s525_s14, 3 }
  0x16   : > { %s138_s6 = scalar_lea.sflag [#allocation3], %s137_s25 }
  0x17   : > { %355 = dma.hbm_to_vmem [thread:$0]  (!%p353_p0), %s151_s5, 128, %s153_s4, %s138_s6  }
  0x18   : > { %p158_p3 = pnand %p338_p1, %p157_p2 }
  0x19   : > { %s618_s7 = sand.u32 (!%p158_p3), 1, %s509_s10  }
  0x1a   : > { %161 = sbr.rel (%p158_p3) target bundleno = 156 (0x9c), region = 28  ;;  %s339_s8 = sshll.u32 (!%p158_p3), %s618_s7, 3 }
  0x1b   : > { %s164_s15 = scalar_lea.sflag (!%p158_p3), [#allocation3], %s618_s7  ;;  %s167_s16 = scalar_lea.vmem (!%p158_p3), [#allocation2], %s339_s8 }
  0x1f   : > { %496 = dma.done.wait (%p591_p8), %s164_s15, 128  }
  0x20   : > { %498 = vsyncadd (%p591_p8), %s164_s15, 4294967168  ;;  %v527_v0 = vmov 0   ;;  %v200_v1 = vld [vmem:[%s668_s1] sm:$0x3]  ;;  %v528_v2 = vmov 269488144  }
  0x21   : > { %412 = vset.pattern.permute.xlu0 %v527_v0  ;;  %v206_v3 = vunpack.c.l.s4 %v528_v2  ;;  %s347_s20 = sshll.u32 %s517_s12, 3  ;;  %v199_v6 = vld [vmem:[%s167_s16] sm:$0xff]  ;;  %s192_s21 = scalar_lea.vmem [#allocation5], %s339_s8 }
  0x22   : > { %203 = vperm.xlu0 %412, %v200_v1   ;;  %s226_s27 = scalar_lea.hbm %s669_s2, %s347_s20  ;;  %s228_s28 = sshll.u32 %s192_s21, 4  ;;  %s229_s28 = int_to_ptr.vmem [resolvable:$true] %s228_s28 }
  0x23   : > { %v207_v4 = vunpack.c.0.s8 %v206_v3  ;;  %s230_s29 = sshll.u32 %s226_s27, 4  ;;  %s213_s30 = scalar_lea.sflag [#allocation4], %s618_s7  ;;  %s231_s29 = int_to_ptr.hbm [resolvable:$true] %s230_s29 }
  0x24   : > { %s457_s3 = sshra.s32 %s231_s29, 4  ;;  %s463_s6 = scalar_lea.hbm %s669_s2, 16  ;;  %s458_s3 = int_to_ptr.hbm [resolvable:$true] %s457_s3 }
  0x25   : > { %s459_s12 = scalar_lea.hbm %s458_s3, 8  ;;  %p464_p7 = scmp.lt.s32.totalorder %s458_s3, %s669_s2 }
  0x26   : > { %p460_p4 = scmp.ne.s32.totalorder %s458_s3, %s459_s12  ;;  %p465_p8 = scmp.lt.s32.totalorder %s463_s6, %s459_s12 }
  0x28   : > { %p461_p5 = pnand %p460_p4, %p595_p9  ;;  %p466_p10 = por %p465_p8, %p464_p7 }
  0x2a   : > { %p462_p6 = pneg %p461_p5 }
  0x2c   : > { %p467_p13 = pnand %p466_p10, %p462_p6 }
  0x94   : > { %v204_v5 = vpop.permute.xlu0 %203 }
  0x95   : > { %v208_v7 = vperm.slane %v204_v5, %v207_v4 }
  0x97   : > { %v210_v8 = vmul.f32 %v208_v7, %v199_v6 }
  0x99   : > { %211 = vst [vmem:[%s192_s21] sm:$0xff] %v210_v8 }
  0x9a   : > { %470 = shalt.err (!%p467_p13)
}
  0x9b   : > { %350 = dma.vmem_to_hbm [thread:$0]  (%p595_p9), %s229_s28, 128, %s231_s29, %s213_s30  }
  0x9c PF: > { %s242_s7 = sand.u32 1, %s505_s9   ;;  %p357_p0 = pnand %p334_p12, %p602_p11 }
  0x9d   : > { %s243_s16 = scalar_lea.sflag [#allocation4], %s242_s7 }
  0x9e   : > { %p358_p1 = pneg %p357_p0 }
  0xa0   : > { %500 = dma.done.wait (%p358_p1), %s243_s16, 128  }
  0xa1   : > { %502 = vsyncadd (%p358_p1), %s243_s16, 4294967168  ;;  %s18_s14 = sadd.s32 1, %s525_s14   ;;  %s674_s9 = smov %s509_s10 }
  0xa2   : > { %p15_p2 = scmp.ge.s32.totalorder %s18_s14, 4   ;;  %s675_s10 = smov %s513_s11 }
  0xa3   : > { %s676_s11 = smov %s600_s23  ;;  %s677_s12 = smov %s521_s13 }
  0xa4   : > { %s678_s13 = smov %s680_s17  ;;  %17 = sbr.rel (!%p15_p2) target bundleno = 6 (0x6), region = 76 }
  0xa9   :  { %249 = vsyncpa [#allocation3], 1 }
  0xaa   :  { %251 = vsyncpa [#allocation3 + $0x1], 1 }
  0xab   :  { %252 = vsyncpa [#allocation4], 1 }
  0xac   :  { %254 = vsyncpa [#allocation4 + $0x1], 1 }

</bundles_post_ra>
